<compile_context>
chip_gen: v7x
topology: tpu7x:2x2x1
jax: 0.10.0
libtpu: 0.0.40
codegen_flags: <defaults>
</compile_context>

<pallas_src>
import functools

import jax
import jax.numpy as jnp
from jax.experimental import pallas as pl
from jax.experimental.pallas import tpu as pltpu


_NEG_BIG = -1e30  # bias for padded output lanes -> exp() underflows to exactly 0
_MIB = 1024 * 1024


def _round_up(x, m):
    return (x + m - 1) // m * m


def _vmem_budget_bytes():
    """Per-generation VMEM limit: physical capacity minus headroom for compiler scratch."""
    phys = 64 * _MIB  # conservative default (v7x has the smallest VMEM)
    try:
        info = pltpu.get_tpu_info()
        phys = int(getattr(info, "vmem_capacity_bytes", phys))
    except Exception:
        pass
    return max(phys - 16 * _MIB, 32 * _MIB)


def _vmem_estimate_bytes(tm, din_p, dh_p, dout_p):
    x_tile = tm * din_p * 4 * 2                   # f32 x, double-buffered stream
    out_tile = tm * dout_p * 2 * 2                # bf16 out, double-buffered stream
    weights = (din_p * dh_p + dh_p * dout_p) * 2  # bf16, single-buffered (constant index)
    biases = (dh_p + dout_p) * 4
    interm = tm * dh_p * (4 + 2)                  # hidden act f32 + bf16 copy (scratch)
    return x_tile + out_tile + weights + biases + interm


def mlp_kernel(x_ref, w1_ref, b1_ref, w2_ref, b2_ref, o_ref):
    # x_ref:  (TM, Din_p)    f32     w1_ref: (Din_p, Dh_p)  bf16   b1_ref: (1, Dh_p)    f32
    # w2_ref: (Dh_p, Dout_p) bf16    b2_ref: (1, Dout_p)    f32    o_ref:  (TM, Dout_p) bf16
    # Cast the streamed f32 tile to bf16 on the VPU (hides under DMA/MXU).
    x_bf16 = x_ref[...].astype(jnp.bfloat16)

    # layer_input: x @ W1 + b1  (bf16 MXU, f32 accumulate)
    h = jnp.dot(x_bf16, w1_ref[...], preferred_element_type=jnp.float32) + b1_ref[...]

    # dropout: eval-mode semantics (identity).
    # TODO(synk): training-mode Dropout(p=0.5) would need pltpu.prng_random_bits masking.

    # relu (f32 on the VPU)
    h = jnp.maximum(h, 0.0)

    # layer_hidden: h @ W2 + b2  (bf16 MXU, f32 accumulate)
    logits = (
        jnp.dot(h.astype(jnp.bfloat16), w2_ref[...], preferred_element_type=jnp.float32)
        + b2_ref[...]
    )

    # Numerically stable softmax over the (lane-padded) feature axis. Padded lanes carry
    # a -1e30 bias, so they never win the max and their exp() is exactly 0 in the sum.
    m = jnp.max(logits, axis=1, keepdims=True)
    e = jnp.exp(logits - m)
    denom = jnp.sum(e, axis=1, keepdims=True)
    o_ref[...] = (e / denom).astype(o_ref.dtype)


def prepare_params(w1, b1, w2, b2):
    """One-time weight prep: pad to 128-lane multiples, cast matmul weights to bf16.

    Kept out of the per-call path so repeated inference never re-reads / re-writes the
    full weight matrices in HBM just to cast/pad them.
    """
    dim_in, dim_hidden = w1.shape
    dim_out = w2.shape[1]
    din_p = _round_up(dim_in, 128)
    dh_p = _round_up(dim_hidden, 128)
    dout_p = _round_up(dim_out, 128)

    w1_p = jnp.pad(w1.astype(jnp.bfloat16), ((0, din_p - dim_in), (0, dh_p - dim_hidden)))
    b1_p = jnp.pad(b1.astype(jnp.float32), ((0, 0), (0, dh_p - dim_hidden)))
    w2_p = jnp.pad(w2.astype(jnp.bfloat16), ((0, dh_p - dim_hidden), (0, dout_p - dim_out)))
    # Padded output lanes get a huge negative bias so the softmax excludes them exactly.
    b2_p = jnp.pad(
        b2.astype(jnp.float32), ((0, 0), (0, dout_p - dim_out)), constant_values=_NEG_BIG
    )
    return w1_p, b1_p, w2_p, b2_p, dim_out


@functools.partial(jax.jit, static_argnames=("dim_out",))
def mlp_forward(x_nchw, w1_p, b1_p, w2_p, b2_p, *, dim_out):
    B = x_nchw.shape[0]
    dim_in = x_nchw.shape[1] * x_nchw.shape[-2] * x_nchw.shape[-1]
    din_p, dh_p = w1_p.shape
    dout_p = w2_p.shape[1]

    vmem_budget = _vmem_budget_bytes()

    # Batch tile: multiple of 16 (bf16 sublane tile), as large as fits VMEM. The kernel
    # is mem-bound on streaming x, so bigger tiles amortize per-step overhead and get
    # closer to the HBM roofline.
    tm = min(512, _round_up(B, 16))
    while tm > 16 and _vmem_estimate_bytes(tm, din_p, dh_p, dout_p) > vmem_budget:
        tm = max(16, _round_up(tm // 2, 16))
    # TODO(synk): if the single-buffered weights alone ever exceed the VMEM budget (very
    # large dim_in/dim_hidden on v7x), add a K-tiling grid axis over Din with an f32
    # accumulator scratch (init/finalize via pl.when, axis marked "arbitrary").

    b_p = _round_up(B, tm)
    # Guarantee >= 2 batch tiles when the batch is big enough, so the "parallel" grid
    # axis can actually be sharded across v7x's 2 TensorCores (harmless on v5e/v6e).
    if b_p // tm == 1 and tm >= 32:
        tm = _round_up(tm // 2, 16)
        b_p = _round_up(B, tm)

    # Flatten exactly as x.view(-1, C*H*W); keep f32 (kernel casts to bf16 on the fly).
    # Only a cheap batch-row pad (+ feature pad that is a no-op when dim_in % 128 == 0).
    x2d = x_nchw.reshape(B, dim_in).astype(jnp.float32)
    x2d = jnp.pad(x2d, ((0, b_p - B), (0, din_p - dim_in)))

    grid = (b_p // tm,)
    resident = pl.Buffered(buffer_count=1)  # constant index_map -> no double buffering
    out = pl.pallas_call(
        mlp_kernel,
        out_shape=jax.ShapeDtypeStruct((b_p, dout_p), jnp.bfloat16),
        grid=grid,
        in_specs=[
            pl.BlockSpec((tm, din_p), lambda i: (i, 0)),  # x: streamed per batch tile
            pl.BlockSpec((din_p, dh_p), lambda i: (0, 0), pipeline_mode=resident),
            pl.BlockSpec((1, dh_p), lambda i: (0, 0), pipeline_mode=resident),
            pl.BlockSpec((dh_p, dout_p), lambda i: (0, 0), pipeline_mode=resident),
            pl.BlockSpec((1, dout_p), lambda i: (0, 0), pipeline_mode=resident),
        ],
        out_specs=pl.BlockSpec((tm, dout_p), lambda i: (i, 0)),
        compiler_params=pltpu.CompilerParams(
            dimension_semantics=("parallel",),  # batch tiles independent (v7x 2-TC sharding)
            vmem_limit_bytes=vmem_budget,
        ),
    )(x2d, w1_p, b1_p, w2_p, b2_p)

    # Strip batch / output-lane padding; return f32 probabilities like the PyTorch module.
    return out[:B, :dim_out].astype(jnp.float32)


def init_params(key, dim_in, dim_hidden, dim_out):
    # Deterministic init mimicking PyTorch nn.Linear default (uniform +/- 1/sqrt(fan_in)).
    k1, k2, k3, k4 = jax.random.split(key, 4)
    bound1 = 1.0 / jnp.sqrt(dim_in)
    bound2 = 1.0 / jnp.sqrt(dim_hidden)
    w1 = jax.random.uniform(k1, (dim_in, dim_hidden), jnp.float32, -bound1, bound1)
    b1 = jax.random.uniform(k2, (1, dim_hidden), jnp.float32, -bound1, bound1)
    w2 = jax.random.uniform(k3, (dim_hidden, dim_out), jnp.float32, -bound2, bound2)
    b2 = jax.random.uniform(k4, (1, dim_out), jnp.float32, -bound2, bound2)
    return w1, b1, w2, b2


if __name__ == "__main__":
    key = jax.random.PRNGKey(0)
    kx, kp = jax.random.split(key)

    # Small shapes consistent with the module's forward:
    # x: (B=2, C=4, H=16, W=16) -> dim_in = 4*16*16 = 1024, hidden=32, out=10
    B, C, H, W = 2, 4, 16, 16
    dim_in, dim_hidden, dim_out = C * H * W, 32, 10

    x = jax.random.normal(kx, (B, C, H, W), jnp.float32)
    w1, b1, w2, b2 = init_params(kp, dim_in, dim_hidden, dim_out)

    # One-time weight prep (outside the hot path), then the per-call forward.
    w1_p, b1_p, w2_p, b2_p, dout = prepare_params(w1, b1, w2, b2)
    out = mlp_forward(x, w1_p, b1_p, w2_p, b2_p, dim_out=dout)
    out = jax.block_until_ready(out)

    # Sanity check against pure-JAX f32 reference (eval-mode dropout). Tolerance covers
    # bf16 matmul inputs and bf16 output storage.
    x2d = x.reshape(B, dim_in)
    h_ref = jnp.maximum(x2d @ w1 + b1, 0.0)
    ref = jax.nn.softmax(h_ref @ w2 + b2, axis=1)
    assert out.shape == (B, dim_out)
    assert jnp.allclose(out, ref, atol=1e-2, rtol=0)
    assert jnp.allclose(jnp.sum(out, axis=1), 1.0, atol=2e-2)

    print("KERNEL_OK")
</pallas_src>

<mosaic_0001>
module attributes {stable_mosaic.version = 11 : i64} {
  func.func @mlp_kernel(%arg0: i32, %arg1: memref<16x1024xf32, #tpu.memory_space<vmem>>, %arg2: memref<1024x128xbf16, #tpu.memory_space<vmem>>, %arg3: memref<1x128xf32, #tpu.memory_space<vmem>>, %arg4: memref<128x128xbf16, #tpu.memory_space<vmem>>, %arg5: memref<1x128xf32, #tpu.memory_space<vmem>>, %arg6: memref<16x128xbf16, #tpu.memory_space<vmem>>) attributes {dimension_semantics = [#tpu.dimension_semantics<parallel>], iteration_bounds = array<i64: 1>, scalar_prefetch = 0 : i64, scratch_operands = 0 : i64, tpu.core_type = #tpu.core_type<tc>, window_params = [{transform_indices = @transform_0, window_bounds = array<i64: 16, 1024>}, {pipeline_mode = #tpu.pipeline_mode<synchronous>, transform_indices = @transform_1, window_bounds = array<i64: 1024, 128>}, {pipeline_mode = #tpu.pipeline_mode<synchronous>, transform_indices = @transform_2, window_bounds = array<i64: 1, 128>}, {pipeline_mode = #tpu.pipeline_mode<synchronous>, transform_indices = @transform_3, window_bounds = array<i64: 128, 128>}, {pipeline_mode = #tpu.pipeline_mode<synchronous>, transform_indices = @transform_4, window_bounds = array<i64: 1, 128>}, {transform_indices = @transform_5, window_bounds = array<i64: 16, 128>}]} {
    %c0 = arith.constant 0 : index
    %c0_0 = arith.constant 0 : index
    %0 = vector.load %arg1[%c0, %c0_0] : memref<16x1024xf32, #tpu.memory_space<vmem>>, vector<16x1024xf32>
    %1 = arith.truncf %0 : vector<16x1024xf32> to vector<16x1024xbf16>
    %c0_1 = arith.constant 0 : index
    %c0_2 = arith.constant 0 : index
    %2 = vector.load %arg2[%c0_1, %c0_2] : memref<1024x128xbf16, #tpu.memory_space<vmem>>, vector<1024x128xbf16>
    %cst = arith.constant dense<0.000000e+00> : vector<16x128xf32>
    %3 = tpu.matmul %1, %2, %cst {dimension_numbers = #tpu.dot_dimension_numbers<[1], [0], [0], [1], [0, 0, 1, 1], [], []>} : vector<16x1024xbf16>, vector<1024x128xbf16>, vector<16x128xf32> -> vector<16x128xf32>
    %c0_3 = arith.constant 0 : index
    %c0_4 = arith.constant 0 : index
    %4 = vector.load %arg3[%c0_3, %c0_4] : memref<1x128xf32, #tpu.memory_space<vmem>>, vector<1x128xf32>
    %5 = vector.broadcast %4 : vector<1x128xf32> to vector<16x128xf32>
    %6 = arith.addf %3, %5 : vector<16x128xf32>
    %cst_5 = arith.constant 0.000000e+00 : f32
    %7 = vector.broadcast %cst_5 : f32 to vector<16x128xf32>
    %8 = arith.maximumf %6, %7 : vector<16x128xf32>
    %9 = arith.truncf %8 : vector<16x128xf32> to vector<16x128xbf16>
    %c0_6 = arith.constant 0 : index
    %c0_7 = arith.constant 0 : index
    %10 = vector.load %arg4[%c0_6, %c0_7] : memref<128x128xbf16, #tpu.memory_space<vmem>>, vector<128x128xbf16>
    %cst_8 = arith.constant dense<0.000000e+00> : vector<16x128xf32>
    %11 = tpu.matmul %9, %10, %cst_8 {dimension_numbers = #tpu.dot_dimension_numbers<[1], [0], [0], [1], [0, 0, 1, 1], [], []>} : vector<16x128xbf16>, vector<128x128xbf16>, vector<16x128xf32> -> vector<16x128xf32>
    %c0_9 = arith.constant 0 : index
    %c0_10 = arith.constant 0 : index
    %12 = vector.load %arg5[%c0_9, %c0_10] : memref<1x128xf32, #tpu.memory_space<vmem>>, vector<1x128xf32>
    %13 = vector.broadcast %12 : vector<1x128xf32> to vector<16x128xf32>
    %14 = arith.addf %11, %13 : vector<16x128xf32>
    %cst_11 = arith.constant dense<0xFF800000> : vector<16xf32>
    %15 = vector.multi_reduction <maximumf>, %14, %cst_11 [1] : vector<16x128xf32> to vector<16xf32>
    %16 = vector.shape_cast %15 : vector<16xf32> to vector<16x1xf32>
    %17 = vector.broadcast %16 : vector<16x1xf32> to vector<16x128xf32>
    %18 = arith.subf %14, %17 : vector<16x128xf32>
    %19 = math.exp %18 : vector<16x128xf32>
    %cst_12 = arith.constant dense<0.000000e+00> : vector<16xf32>
    %20 = vector.multi_reduction <add>, %19, %cst_12 [1] : vector<16x128xf32> to vector<16xf32>
    %21 = vector.shape_cast %20 : vector<16xf32> to vector<16x1xf32>
    %22 = vector.broadcast %21 : vector<16x1xf32> to vector<16x128xf32>
    %23 = arith.divf %19, %22 : vector<16x128xf32>
    %24 = arith.truncf %23 : vector<16x128xf32> to vector<16x128xbf16>
    %c0_13 = arith.constant 0 : index
    %c0_14 = arith.constant 0 : index
    %25 = vector.load %arg6[%c0_13, %c0_14] : memref<16x128xbf16, #tpu.memory_space<vmem>>, vector<16x128xbf16>
    tpu.vector_store %arg6[%c0_13, %c0_14], %24 {strides = array<i32>} : memref<16x128xbf16, #tpu.memory_space<vmem>>, vector<16x128xbf16>,
    return
  }
  func.func @transform_0(%arg0: i32) -> (i32, i32) {
    %c0_i32 = arith.constant 0 : i32
    %c0_i32_0 = arith.constant 0 : i32
    return %arg0, %c0_i32 : i32, i32
  }
  func.func @transform_1(%arg0: i32) -> (i32, i32) {
    %c0_i32 = arith.constant 0 : i32
    %c0_i32_0 = arith.constant 0 : i32
    %c0_i32_1 = arith.constant 0 : i32
    return %c0_i32, %c0_i32_0 : i32, i32
  }
  func.func @transform_2(%arg0: i32) -> (i32, i32) {
    %c0_i32 = arith.constant 0 : i32
    %c0_i32_0 = arith.constant 0 : i32
    %c0_i32_1 = arith.constant 0 : i32
    return %c0_i32, %c0_i32_0 : i32, i32
  }
  func.func @transform_3(%arg0: i32) -> (i32, i32) {
    %c0_i32 = arith.constant 0 : i32
    %c0_i32_0 = arith.constant 0 : i32
    %c0_i32_1 = arith.constant 0 : i32
    return %c0_i32, %c0_i32_0 : i32, i32
  }
  func.func @transform_4(%arg0: i32) -> (i32, i32) {
    %c0_i32 = arith.constant 0 : i32
    %c0_i32_0 = arith.constant 0 : i32
    %c0_i32_1 = arith.constant 0 : i32
    return %c0_i32, %c0_i32_0 : i32, i32
  }
  func.func @transform_5(%arg0: i32) -> (i32, i32) {
    %c0_i32 = arith.constant 0 : i32
    %c0_i32_0 = arith.constant 0 : i32
    return %arg0, %c0_i32 : i32, i32
  }
}

</mosaic_0001>

<bundles_post_ra>
// kernel: mlp_forward.1
= control target key start
LH: loop header
LB: loop body
LE: loop exit
PB: predicated region body
PF: predicated region fallthrough
CT: control target
= control target key end

     0   :  { %10 = vsyncpa [#allocation3], 0  ;;  %s1199_s18 = smov [#allocation2]   ;;  %s1327_s0 = inlined_call_operand.vmem [shape: f32[16,1024], index: 0, kind: input, shape index: {}]   ;;  %s1328_s1 = inlined_call_operand.hbm [shape: bf16[1024,128], index: 1, kind: input, shape index: {}]   ;;  %s1329_s2 = inlined_call_operand.vmem [shape: f32[1,128], index: 2, kind: input, shape index: {}]   ;;  %s1330_s3 = inlined_call_operand.vmem [shape: bf16[128,128], index: 3, kind: input, shape index: {}]   ;;  %s1331_s4 = inlined_call_operand.vmem [shape: f32[1,128], index: 4, kind: input, shape index: {}]   ;;  %s1332_s5 = inlined_call_operand.vmem [shape: bf16[16,128], index: 5, kind: output, shape index: {}]  }
   0x1   :  { %s18_s19 = sshll.u32 %s1199_s18, 4  ;;  %s1175_s22 = scalar_lea.hbm %s1328_s1, 8192  ;;  %s19_s19 = int_to_ptr.vmem [resolvable:$true] %s18_s19 }
   0x2   :  { %p1176_p0 = scmp.ne.s32.totalorder %s1328_s1, %s1175_s22  ;;  %p1179_p1 = scmp.lt.u32.totalorder %s1175_s22, %s1328_s1 }
   0x4   :  { %p1181_p2 = pnand %p1179_p1, %p1176_p0 }
   0x6   :  { %1184 = shalt.err (!%p1181_p2)
}
   0x7   :  { %s1185_s27 = scalar_lea.vmem %s19_s19, 8192  ;;  %p1190_p4 = scmp.lt.s32.totalorder %s19_s19, %s19_s19 }
   0x8   :  { %p1186_p3 = scmp.ne.s32.totalorder %s19_s19, %s1185_s27  ;;  %p1191_p5 = scmp.lt.s32.totalorder %s1185_s27, %s1185_s27 }
   0xa   :  { %p1192_p6 = por %p1191_p5, %p1190_p4 }
   0xc   :  { %p1193_p7 = pnand %p1192_p6, %p1186_p3 }
   0xe   :  { %1196 = shalt.err (!%p1193_p7)
}
   0xf   :  { %s1200_s28 = smov 64   ;;  %s1201_s29 = smov 4  }
  0x10   :  { %24 = dma.hbm_to_vmem [thread:$0]  %s1328_s1, 8192, %s19_s19, [#allocation3], %s1200_s28, %s1200_s28, %s1201_s29  }
  0x11   :  { %1197 = dma.done.wait [#allocation3], 8192  }
  0x12   :  { %1198 = vsyncadd [#allocation3], 4294959104  ;;  %v1095_v0 = vld [vmem:[#allocation2 + $0x40] sm:$0xff]   ;;  %v1099_v4 = vld [vmem:[#allocation2 + $0x48] sm:$0xff]   ;;  %vm1203_vm0 = vmmov 0  }
  0x13   :  { %v1096_v1 = vld [vmem:[#allocation2 + $0xc0] sm:$0xff]   ;;  %973 = vmatprep.subr.bf16.mxu0 %v1095_v0  ;;  %v1100_v5 = vld [vmem:[#allocation2 + $0xc8] sm:$0xff]   ;;  %v1103_v8 = vld [vmem:[#allocation2 + $0x50] sm:$0xff]  }
  0x14   :  { %v1097_v2 = vld [vmem:[#allocation2] sm:$0xff]   ;;  %995 = vmatprep.subr.bf16.mxu1 %v1096_v1  ;;  %v1101_v6 = vld [vmem:[#allocation2 + $0x8] sm:$0xff]   ;;  %v1104_v9 = vld [vmem:[#allocation2 + $0xd0] sm:$0xff]  }
  0x15   :  { %v1098_v3 = vld [vmem:[#allocation2 + $0x80] sm:$0xff]   ;;  %974 = vmatpush3.bf16.msra.mxu0 %v1097_v2  ;;  %v1102_v7 = vld [vmem:[#allocation2 + $0x88] sm:$0xff]   ;;  %v1105_v10 = vld [vmem:[#allocation2 + $0x10] sm:$0xff]  }
  0x16   :  { %996 = vmatpush3.bf16.msra.mxu1 %v1098_v3  ;;  %975 = vmatprep.subr.bf16.mxu0 %v1099_v4  ;;  %v1106_v11 = vld [vmem:[#allocation2 + $0x90] sm:$0xff]   ;;  %v1107_v12 = vld [vmem:[#allocation2 + $0x58] sm:$0xff]   ;;  %v1111_v16 = vld [vmem:[#allocation2 + $0x60] sm:$0xff]  }
  0x17   :  { %997 = vmatprep.subr.bf16.mxu1 %v1100_v5  ;;  %v1108_v13 = vld [vmem:[#allocation2 + $0xd8] sm:$0xff]   ;;  %v1112_v17 = vld [vmem:[#allocation2 + $0xe0] sm:$0xff]   ;;  %v1115_v20 = vld [vmem:[#allocation2 + $0x68] sm:$0xff]  }
  0x18   :  { %v1109_v14 = vld [vmem:[#allocation2 + $0x18] sm:$0xff]   ;;  %v1113_v18 = vld [vmem:[#allocation2 + $0x20] sm:$0xff]   ;;  %v1116_v21 = vld [vmem:[#allocation2 + $0xe8] sm:$0xff]  }
  0x19   :  { %976 = vmatpush3.bf16.msra.mxu0 %v1101_v6  ;;  %v1110_v15 = vld [vmem:[#allocation2 + $0x98] sm:$0xff]   ;;  %v1114_v19 = vld [vmem:[#allocation2 + $0xa0] sm:$0xff]   ;;  %v1117_v22 = vld [vmem:[#allocation2 + $0x28] sm:$0xff]  }
  0x1a   :  { %998 = vmatpush3.bf16.msra.mxu1 %v1102_v7  ;;  %977 = vmatprep.subr.bf16.mxu0 %v1103_v8  ;;  %v1118_v23 = vld [vmem:[#allocation2 + $0xa8] sm:$0xff]   ;;  %v1119_v24 = vld [vmem:[#allocation2 + $0x70] sm:$0xff]   ;;  %v1123_v28 = vld [vmem:[#allocation2 + $0x78] sm:$0xff]  }
  0x1b   :  { %999 = vmatprep.subr.bf16.mxu1 %v1104_v9  ;;  %v1120_v25 = vld [vmem:[#allocation2 + $0xf0] sm:$0xff]   ;;  %v1124_v29 = vld [vmem:[#allocation2 + $0xf8] sm:$0xff]   ;;  %v36_v32 = vld [vmem:[%s1327_s0 + $0x8] sm:$0xff] }
  0x1c   :  { %v1121_v26 = vld [vmem:[#allocation2 + $0x30] sm:$0xff]   ;;  %v1125_v30 = vld [vmem:[#allocation2 + $0x38] sm:$0xff]   ;;  %v44_v33 = vld [vmem:[%s1327_s0 + $0x48] sm:$0xff] }
  0x1d   :  { %978 = vmatpush3.bf16.msra.mxu0 %v1105_v10  ;;  %v1122_v27 = vld [vmem:[#allocation2 + $0xb0] sm:$0xff]   ;;  %v1126_v31 = vld [vmem:[#allocation2 + $0xb8] sm:$0xff]   ;;  %v52_v35 = vpack.c.bf16 %v44_v33, %v36_v32  ;;  %v35_v37 = vld [vmem:[%s1327_s0] sm:$0xff] }
  0x1e   :  { %1000 = vmatpush3.bf16.msra.mxu1 %v1106_v11  ;;  %979 = vmatprep.subr.bf16.mxu0 %v1107_v12  ;;  %v38_v34 = vld [vmem:[%s1327_s0 + $0x18] sm:$0xff]  ;;  %v43_v38 = vld [vmem:[%s1327_s0 + $0x40] sm:$0xff]  ;;  %v37_v41 = vld [vmem:[%s1327_s0 + $0x10] sm:$0xff] }
  0x1f   :  { %1001 = vmatprep.subr.bf16.mxu1 %v1108_v13  ;;  %v46_v36 = vld [vmem:[%s1327_s0 + $0x58] sm:$0xff]  ;;  %v51_v40 = vpack.c.bf16 %v43_v38, %v35_v37  ;;  %v45_v42 = vld [vmem:[%s1327_s0 + $0x50] sm:$0xff]  ;;  %610 = vmatprep.mubr.bf16.mxu0 %v52_v35  ;;  %v1127_v44 = vld [vmem:[#allocation2 + $0x140] sm:$0xff]  }
  0x20   :  { %v54_v39 = vpack.c.bf16 %v46_v36, %v38_v34  ;;  %v53_v43 = vpack.c.bf16 %v45_v42, %v37_v41  ;;  %v1128_v45 = vld [vmem:[#allocation2 + $0x1c0] sm:$0xff]   ;;  %v1131_v48 = vld [vmem:[#allocation2 + $0x148] sm:$0xff]   ;;  %v1135_v52 = vld [vmem:[#allocation2 + $0x150] sm:$0xff]  }
  0x21   :  { %980 = vmatpush3.bf16.msra.mxu0 %v1109_v14  ;;  %v1129_v46 = vld [vmem:[#allocation2 + $0x100] sm:$0xff]   ;;  %v1132_v49 = vld [vmem:[#allocation2 + $0x1c8] sm:$0xff]   ;;  %v1136_v53 = vld [vmem:[#allocation2 + $0x1d0] sm:$0xff]  }
  0x22   :  { %1002 = vmatpush3.bf16.msra.mxu1 %v1110_v15  ;;  %981 = vmatprep.subr.bf16.mxu0 %v1111_v16  ;;  %v1130_v47 = vld [vmem:[#allocation2 + $0x180] sm:$0xff]   ;;  %v1133_v50 = vld [vmem:[#allocation2 + $0x108] sm:$0xff]   ;;  %v1137_v54 = vld [vmem:[#allocation2 + $0x110] sm:$0xff]  }
  0x23   :  { %1003 = vmatprep.subr.bf16.mxu1 %v1112_v17  ;;  %651 = vmatprep.mubr.bf16.mxu1 %v54_v39  ;;  %v1134_v51 = vld [vmem:[#allocation2 + $0x188] sm:$0xff]   ;;  %v1138_v55 = vld [vmem:[#allocation2 + $0x190] sm:$0xff]   ;;  %v1139_v56 = vld [vmem:[#allocation2 + $0x158] sm:$0xff]  }
  0x24   :  { %v1140_v57 = vld [vmem:[#allocation2 + $0x1d8] sm:$0xff]   ;;  %v1143_v60 = vld [vmem:[#allocation2 + $0x160] sm:$0xff]   ;;  %v1147_v0 = vld [vmem:[#allocation2 + $0x168] sm:$0xff]  }
  0x25   :  { %982 = vmatpush3.bf16.msra.mxu0 %v1113_v18  ;;  %v1141_v58 = vld [vmem:[#allocation2 + $0x118] sm:$0xff]   ;;  %v1144_v61 = vld [vmem:[#allocation2 + $0x1e0] sm:$0xff]   ;;  %v1148_v1 = vld [vmem:[#allocation2 + $0x1e8] sm:$0xff]  }
  0x26   :  { %1004 = vmatpush3.bf16.msra.mxu1 %v1114_v19  ;;  %983 = vmatprep.subr.bf16.mxu0 %v1115_v20  ;;  %v1142_v59 = vld [vmem:[#allocation2 + $0x198] sm:$0xff]   ;;  %v1145_v62 = vld [vmem:[#allocation2 + $0x120] sm:$0xff]   ;;  %v1149_v2 = vld [vmem:[#allocation2 + $0x128] sm:$0xff]  }
  0x27   :  { %1005 = vmatprep.subr.bf16.mxu1 %v1116_v21  ;;  %v1146_v63 = vld [vmem:[#allocation2 + $0x1a0] sm:$0xff]   ;;  %v1150_v3 = vld [vmem:[#allocation2 + $0x1a8] sm:$0xff]   ;;  %v1151_v4 = vld [vmem:[#allocation2 + $0x170] sm:$0xff]  }
  0x28   :  { %v1152_v5 = vld [vmem:[#allocation2 + $0x1f0] sm:$0xff]   ;;  %v1155_v8 = vld [vmem:[#allocation2 + $0x178] sm:$0xff]   ;;  %v40_v12 = vld [vmem:[%s1327_s0 + $0x28] sm:$0xff] }
  0x29   :  { %984 = vmatpush3.bf16.msra.mxu0 %v1117_v22  ;;  %v1153_v6 = vld [vmem:[#allocation2 + $0x130] sm:$0xff]   ;;  %v1156_v9 = vld [vmem:[#allocation2 + $0x1f8] sm:$0xff]   ;;  %v48_v13 = vld [vmem:[%s1327_s0 + $0x68] sm:$0xff] }
  0x2a   :  { %1006 = vmatpush3.bf16.msra.mxu1 %v1118_v23  ;;  %985 = vmatprep.subr.bf16.mxu0 %v1119_v24  ;;  %v1154_v7 = vld [vmem:[#allocation2 + $0x1b0] sm:$0xff]   ;;  %v1157_v10 = vld [vmem:[#allocation2 + $0x138] sm:$0xff]   ;;  %v56_v16 = vpack.c.bf16 %v48_v13, %v40_v12  ;;  %v39_v18 = vld [vmem:[%s1327_s0 + $0x20] sm:$0xff] }
  0x2b   :  { %1007 = vmatprep.subr.bf16.mxu1 %v1120_v25  ;;  %v1158_v11 = vld [vmem:[#allocation2 + $0x1b8] sm:$0xff]   ;;  %v47_v19 = vld [vmem:[%s1327_s0 + $0x60] sm:$0xff]  ;;  %v41_v20 = vld [vmem:[%s1327_s0 + $0x30] sm:$0xff]  ;;  %v1202_v25 = vmov 0.0  }
  0x2c   :  { %v42_v14 = vld [vmem:[%s1327_s0 + $0x38] sm:$0xff]  ;;  %v55_v21 = vpack.c.bf16 %v47_v19, %v39_v18  ;;  %v49_v22 = vld [vmem:[%s1327_s0 + $0x70] sm:$0xff]  ;;  %v1159_v24 = vld [vmem:[%s1330_s3] sm:$0xff]  }
  0x2d   :  { %986 = vmatpush3.bf16.msra.mxu0 %v1121_v26  ;;  %v50_v15 = vld [vmem:[%s1327_s0 + $0x78] sm:$0xff]  ;;  %v57_v23 = vpack.c.bf16 %v49_v22, %v41_v20  ;;  %v1160_v26 = vld [vmem:[%s1330_s3 + $0x8] sm:$0xff]   ;;  %v890_v35 = vld [vmem:[%s1329_s2] ss:$0 sm:$0xff] }
  0x2e   :  { %1008 = vmatpush3.bf16.msra.mxu1 %v1122_v27  ;;  %987 = vmatprep.subr.bf16.mxu0 %v1123_v28  ;;  %v58_v17 = vpack.c.bf16 %v50_v15, %v42_v14  ;;  %v1161_v27 = vld [vmem:[%s1330_s3 + $0x10] sm:$0xff]   ;;  %v1162_v28 = vld [vmem:[%s1330_s3 + $0x18] sm:$0xff]  }
  0x2f   :  { %1009 = vmatprep.subr.bf16.mxu1 %v1124_v29  ;;  %v1163_v29 = vld [vmem:[%s1330_s3 + $0x20] sm:$0xff]   ;;  %v1166_v32 = vld [vmem:[%s1330_s3 + $0x38] sm:$0xff]  }
  0x31   :  { %988 = vmatpush3.bf16.msra.mxu0 %v1125_v30  ;;  %v1164_v30 = vld [vmem:[%s1330_s3 + $0x28] sm:$0xff]  }
  0x32   :  { %1010 = vmatpush3.bf16.msra.mxu1 %v1126_v31  ;;  %1017 = vmatprep.subr.bf16.mxu0 %v1127_v44  ;;  %v1165_v31 = vld [vmem:[%s1330_s3 + $0x30] sm:$0xff]  }
  0x33   :  { %1039 = vmatprep.subr.bf16.mxu1 %v1128_v45 }
  0x34   :  { %611 = vmatmul.mubr.bf16.vlgmr.msra.gmra.mrb[0].mxu0 %v51_v40 }
  0x35   :  { %652 = vmatmul.mubr.bf16.vlgmr.msra.gmra.mrb[0].mxu1 %v53_v43  ;;  %1018 = vmatpush3.bf16.msra.mxu0 %v1129_v46 }
  0x36   :  { %1040 = vmatpush3.bf16.msra.mxu1 %v1130_v47  ;;  %1019 = vmatprep.subr.bf16.mxu0 %v1131_v48 }
  0x37   :  { %1041 = vmatprep.subr.bf16.mxu1 %v1132_v49  ;;  %692 = vmatprep.mubr.bf16.mxu0 %v56_v16 }
  0x38   :  { %733 = vmatprep.mubr.bf16.mxu1 %v58_v17 }
  0x39   :  { %1020 = vmatpush3.bf16.msra.mxu0 %v1133_v50 }
  0x3a   :  { %1042 = vmatpush3.bf16.msra.mxu1 %v1134_v51  ;;  %1021 = vmatprep.subr.bf16.mxu0 %v1135_v52 }
  0x3b   :  { %1043 = vmatprep.subr.bf16.mxu1 %v1136_v53 }
  0x3d   :  { %1022 = vmatpush3.bf16.msra.mxu0 %v1137_v54 }
  0x3e   :  { %1044 = vmatpush3.bf16.msra.mxu1 %v1138_v55  ;;  %1023 = vmatprep.subr.bf16.mxu0 %v1139_v56 }
  0x3f   :  { %1045 = vmatprep.subr.bf16.mxu1 %v1140_v57 }
  0x41   :  { %1024 = vmatpush3.bf16.msra.mxu0 %v1141_v58 }
  0x42   :  { %1046 = vmatpush3.bf16.msra.mxu1 %v1142_v59  ;;  %1025 = vmatprep.subr.bf16.mxu0 %v1143_v60 }
  0x43   :  { %1047 = vmatprep.subr.bf16.mxu1 %v1144_v61 }
  0x45   :  { %1026 = vmatpush3.bf16.msra.mxu0 %v1145_v62 }
  0x46   :  { %1048 = vmatpush3.bf16.msra.mxu1 %v1146_v63  ;;  %1027 = vmatprep.subr.bf16.mxu0 %v1147_v0 }
  0x47   :  { %1049 = vmatprep.subr.bf16.mxu1 %v1148_v1 }
  0x49   :  { %1028 = vmatpush3.bf16.msra.mxu0 %v1149_v2 }
  0x4a   :  { %1050 = vmatpush3.bf16.msra.mxu1 %v1150_v3  ;;  %1029 = vmatprep.subr.bf16.mxu0 %v1151_v4 }
  0x4b   :  { %1051 = vmatprep.subr.bf16.mxu1 %v1152_v5  ;;  %v955_v5 = vld [vmem:[%s1331_s4] ss:$0 sm:$0xff] }
  0x4d   :  { %1030 = vmatpush3.bf16.msra.mxu0 %v1153_v6 }
  0x4e   :  { %1052 = vmatpush3.bf16.msra.mxu1 %v1154_v7  ;;  %1031 = vmatprep.subr.bf16.mxu0 %v1155_v8 }
  0x4f   :  { %1053 = vmatprep.subr.bf16.mxu1 %v1156_v9 }
  0x51   :  { %1032 = vmatpush3.bf16.msra.mxu0 %v1157_v10 }
  0x52   :  { %1054 = vmatpush3.bf16.msra.mxu1 %v1158_v11  ;;  %1070 = vmatprep.subr.bf16.mxu0 %v1202_v25 }
  0x54   :  { %693 = vmatmul.mubr.bf16.vlgmr.msra.gmra.mrb[4].mxu0 %v55_v21 }
  0x55   :  { %734 = vmatmul.mubr.bf16.vlgmr.msra.gmra.mrb[4].mxu1 %v57_v23  ;;  %1071 = vmatpush3.bf16.msra.mxu0 %v1159_v24 }
  0x56   :  { %1072 = vmatprep.subr.bf16.mxu0 %v1202_v25  ;;  %1086 = vmatprep.mubr.msk.bf16.mxu0 %vm1203_vm0, %v1202_v25 }
  0x59   :  { %1073 = vmatpush3.bf16.msra.mxu0 %v1160_v26 }
  0x5a   :  { %1074 = vmatprep.subr.bf16.mxu0 %v1202_v25 }
  0x5d   :  { %1075 = vmatpush3.bf16.msra.mxu0 %v1161_v27 }
  0x5e   :  { %1076 = vmatprep.subr.bf16.mxu0 %v1202_v25 }
  0x61   :  { %1077 = vmatpush3.bf16.msra.mxu0 %v1162_v28 }
  0x62   :  { %1078 = vmatprep.subr.bf16.mxu0 %v1202_v25 }
  0x65   :  { %1079 = vmatpush3.bf16.msra.mxu0 %v1163_v29 }
  0x66   :  { %1080 = vmatprep.subr.bf16.mxu0 %v1202_v25 }
  0x69   :  { %1081 = vmatpush3.bf16.msra.mxu0 %v1164_v30 }
  0x6a   :  { %1082 = vmatprep.subr.bf16.mxu0 %v1202_v25 }
  0x6d   :  { %1083 = vmatpush3.bf16.msra.mxu0 %v1165_v31 }
  0x6e   :  { %1084 = vmatprep.subr.bf16.mxu0 %v1202_v25 }
  0x71   :  { %1085 = vmatpush3.bf16.msra.mxu0 %v1166_v32 }
 0x107   :  { %v989_v33 = vpop.f32.mrb[0].mxu0 }
 0x108   :  { %v1011_v34 = vpop.f32.mrb[0].mxu1  ;;  %v990_v36 = vpop.f32.mrb[1].mxu0 }
 0x109   :  { %v991_v37 = vadd.f32 %v990_v36, %v989_v33  ;;  %v1012_v38 = vpop.f32.mrb[1].mxu1  ;;  %v992_v39 = vpop.f32.mrb[2].mxu0 }
 0x10a   :  { %v1013_v40 = vadd.f32 %v1012_v38, %v1011_v34  ;;  %v1014_v41 = vpop.f32.mrb[2].mxu1  ;;  %v993_v42 = vpop.f32.mrb[3].mxu0 }
 0x10b   :  { %v613_v43 = vadd.f32 %v991_v37, %v890_v35  ;;  %v994_v44 = vadd.f32 %v993_v42, %v992_v39  ;;  %v1015_v45 = vpop.f32.mrb[3].mxu1 }
 0x10c   :  { %v1016_v46 = vadd.f32 %v1015_v45, %v1014_v41 }
 0x10d   :  { %v654_v47 = vadd.f32 %v1013_v40, %v613_v43  ;;  %v616_v48 = vadd.f32 %v994_v44, %v890_v35 }
 0x10f   :  { %v657_v49 = vadd.f32 %v1016_v46, %v616_v48 }
 0x127   :  { %v1033_v50 = vpop.f32.mrb[4].mxu0 }
 0x128   :  { %v1055_v51 = vpop.f32.mrb[4].mxu1  ;;  %v1034_v52 = vpop.f32.mrb[5].mxu0 }
 0x129   :  { %v1035_v53 = vadd.f32 %v1034_v52, %v1033_v50  ;;  %v1056_v54 = vpop.f32.mrb[5].mxu1  ;;  %v1036_v55 = vpop.f32.mrb[6].mxu0 }
 0x12a   :  { %v1057_v56 = vadd.f32 %v1056_v54, %v1055_v51  ;;  %v1058_v57 = vpop.f32.mrb[6].mxu1  ;;  %v1037_v58 = vpop.f32.mrb[7].mxu0 }
 0x12b   :  { %v695_v59 = vadd.f32 %v1035_v53, %v654_v47  ;;  %v1038_v60 = vadd.f32 %v1037_v58, %v1036_v55  ;;  %v1059_v61 = vpop.f32.mrb[7].mxu1 }
 0x12c   :  { %v1060_v62 = vadd.f32 %v1059_v61, %v1058_v57 }
 0x12d   :  { %v736_v63 = vadd.f32 %v1057_v56, %v695_v59  ;;  %v698_v0 = vadd.f32 %v1038_v60, %v657_v49 }
 0x12f   :  { %v739_v1 = vadd.f32 %v1060_v62, %v698_v0  ;;  %v742_v2 = vmax.f32 %v736_v63, 0.0 }
 0x131   :  { %v743_v3 = vmax.f32 %v739_v1, 0.0 }
 0x133   :  { %v744_v4 = vpack.c.bf16 %v743_v3, %v742_v2 }
 0x135   :  { %1087 = vmatmul.mubr.bf16.vlgmr.msra.gmra.mrb[8].mxu0 %v744_v4 }
 0x208   :  { %v850_v6 = vpop.f32.mrb[8].mxu0 }
 0x209   :  { %v851_v7 = vadd.f32 %v955_v5, %v850_v6  ;;  %v1088_v8 = vpop.f32.mrb[9].mxu0 }
 0x20a   :  { %v853_v9 = vpop.f32.mrb[10].mxu0 }
 0x20b   :  { %857 = vmax.xlane.f32.xlu0 %v851_v7  ;;  %v1089_v10 = vpop.f32.mrb[11].mxu0  ;;  %v854_v11 = vadd.f32 %v955_v5, %v853_v9 }
 0x20f   :  { %859 = vmax.xlane.f32.xlu0 %v854_v11 }
 0x298   :  { %v858_v12 = vpop.xlane.xlu0 %857 }
 0x299   :  { %v861_v13 = vsub.f32 %v851_v7, %v858_v12 }
 0x29b   :  { %v863_v14 = vmul.f32 1.442695, %v861_v13 }
 0x29c   :  { %v860_v15 = vpop.xlane.xlu0 %859 }
 0x29d   :  { %1167 = vpow2.f32 %v863_v14  ;;  %v862_v16 = vsub.f32 %v854_v11, %v860_v15 }
 0x29f   :  { %v865_v17 = vmul.f32 1.442695, %v862_v16 }
 0x2a1   :  { %1169 = vpow2.f32 %v865_v17 }
 0x2a7   :  { %v1168_v18 = vpop.eup %1167 }
 0x2a8   :  { %867 = vadd.xlane.f32.xlu1 %v1168_v18 }
 0x2ab   :  { %v1170_v19 = vpop.eup %1169 }
 0x2ac   :  { %869 = vadd.xlane.f32.xlu1 %v1170_v19 }
 0x335   :  { %v868_v20 = vpop.xlane.xlu1 %867 }
 0x336   :  { %1171 = vrcp.f32 %v868_v20 }
 0x339   :  { %v870_v21 = vpop.xlane.xlu1 %869 }
 0x33a   :  { %1173 = vrcp.f32 %v870_v21 }
 0x340   :  { %v1172_v22 = vpop.eup %1171 }
 0x341   :  { %v872_v24 = vmul.f32 %v1172_v22, %v1168_v18 }
 0x344   :  { %v1174_v23 = vpop.eup %1173 }
 0x345   :  { %v874_v25 = vmul.f32 %v1174_v23, %v1170_v19 }
 0x347   :  { %v971_v26 = vpack.c.bf16 %v874_v25, %v872_v24 }
 0x349   :  { %972 = vst [vmem:[%s1332_s5] sm:$0xff] %v971_v26  }
 0x34a   :  { %889 = vsyncpa [#allocation3], 1 }

</bundles_post_ra>
